<compile_context>
chip_gen: v7x
topology: tpu7x:2x2x1
jax: 0.10.0
libtpu: 0.0.40
codegen_flags: <defaults>
</compile_context>

<pallas_src>
import functools

import jax
import jax.numpy as jnp
from jax.experimental import pallas as pl
from jax.experimental.pallas import tpu as pltpu


def _sublane_multiple(dtype) -> int:
    # Minimum second-minor tile per dtype: 8 (4B), 16 (2B), 32 (1B).
    itemsize = jnp.dtype(dtype).itemsize
    return {4: 8, 2: 16, 1: 32}.get(itemsize, 8)


def _round_up(x: int, m: int) -> int:
    return ((x + m - 1) // m) * m


def _physical_vmem_bytes() -> int:
    """Physical VMEM per TensorCore, with conservative fallbacks."""
    try:
        info = pltpu.get_tpu_info()
        for attr in ("vmem_capacity_bytes", "vmem_bytes", "vmem_size_bytes"):
            v = getattr(info, attr, None)
            if v:
                return int(v)
    except Exception:
        pass
    try:
        kind = jax.devices()[0].device_kind.lower()
    except Exception:
        kind = ""
    if "v7" in kind:
        return 64 * 1024 * 1024
    # v5e / v6e / unknown: 128 MiB physical per TensorCore.
    return 128 * 1024 * 1024


# ----------------------------- kernel bodies ------------------------------- #

def _copy_kernel(x_ref, o_ref):
    # BlockSpec already carved the exact trimmed extents: pure block copy.
    o_ref[...] = x_ref[...]


def _slice_h_kernel(x_ref, o_ref, *, size):
    # Only the sublane (H) axis of the input block is padded.
    o_ref[...] = x_ref[:, :, :size, :]


def _slice_w_kernel(x_ref, o_ref, *, size):
    # Only the lane (W) axis of the input block is padded.
    o_ref[...] = x_ref[:, :, :, :size]


def _slice_hw_kernel(x_ref, o_ref, *, size):
    # Both trailing axes of the input block are padded.
    o_ref[...] = x_ref[:, :, :size, :size]


# ------------------------------- wrapper ----------------------------------- #

def trim_pallas(x, image_size):
    """Pallas equivalent of Trim(image_size).forward(x) for NCHW input."""
    n, c, h, w = x.shape
    size = int(image_size)
    assert 0 < size <= h and size <= w, (size, h, w)

    dtype = x.dtype
    itemsize = jnp.dtype(dtype).itemsize
    sub = _sublane_multiple(dtype)

    # --- Trim inside the BlockSpec so the untrimmed region is never DMA'd. ---
    # Block extents must be a multiple of (sublane, 128) or equal the full dim.
    h_blk = _round_up(size, sub)
    if h_blk >= h:
        h_blk = h
    w_blk = _round_up(size, 128)
    if w_blk >= w:
        w_blk = w

    slice_h = h_blk != size
    slice_w = w_blk != size

    # --- Per-chip VMEM budget (≈40% of physical, enforced below). ---
    physical_vmem = _physical_vmem_bytes()
    budget = (physical_vmem * 2) // 5

    in_per_c = h_blk * w_blk * itemsize
    out_per_c = size * size * itemsize
    # Masked in-kernel slice materializes an output-sized VMEM temp.
    temp_per_c = out_per_c if (slice_h or slice_w) else 0
    per_c = 2 * (in_per_c + out_per_c) + temp_per_c   # double-buffered in/out

    tc = max(1, min(c, budget // max(per_c, 1)))
    tn = 1
    if tc >= c:
        # Whole channel extent fits: fold N into the block for bigger DMAs.
        tc = c
        per_n = per_c * c
        tn = max(1, min(n, budget // max(per_n, 1)))

    # Keep >= 2 grid steps when possible: both v7x TensorCores get work and
    # the pipeline has at least two iterations to overlap DMA with.
    if pl.cdiv(n, tn) * pl.cdiv(c, tc) < 2:
        if n > 1:
            tn = pl.cdiv(n, 2)
        elif c > 1:
            tc = pl.cdiv(c, 2)

    grid = (pl.cdiv(n, tn), pl.cdiv(c, tc))

    if slice_h and slice_w:
        kernel = functools.partial(_slice_hw_kernel, size=size)
    elif slice_h:
        kernel = functools.partial(_slice_h_kernel, size=size)
    elif slice_w:
        kernel = functools.partial(_slice_w_kernel, size=size)
    else:
        kernel = _copy_kernel

    # Explicit scoped-VMEM limit: 1.3x the honest double-buffered footprint
    # (incl. slice temp) + headroom for Mosaic internal scratch, never above
    # physical VMEM (v5e default 16 MiB would otherwise cap us).
    footprint = tn * tc * (2 * (in_per_c + out_per_c) + temp_per_c)
    vmem_limit = int(min(physical_vmem,
                         max(footprint * 13 // 10 + (4 << 20), 16 << 20)))

    cost = pl.CostEstimate(
        flops=0,
        transcendentals=0,
        bytes_accessed=n * c * (h_blk * w_blk + size * size) * itemsize,
    )

    return pl.pallas_call(
        kernel,
        out_shape=jax.ShapeDtypeStruct((n, c, size, size), dtype),
        grid=grid,
        in_specs=[
            pl.BlockSpec((tn, tc, h_blk, w_blk), lambda i, j: (i, j, 0, 0)),
        ],
        out_specs=pl.BlockSpec((tn, tc, size, size), lambda i, j: (i, j, 0, 0)),
        compiler_params=pltpu.CompilerParams(
            dimension_semantics=("parallel", "parallel"),
            vmem_limit_bytes=vmem_limit,
        ),
        cost_estimate=cost,
    )(x)


def trim(x, image_size, *, force_pallas=False):
    """Trim dispatcher: XLA strided slice for tiny / lane-sparse shapes,
    Pallas bandwidth-bound copy otherwise."""
    if force_pallas:
        return trim_pallas(x, image_size)
    if x.size < (1 << 20):
        # pallas_call per-call/per-step overhead dwarfs the work at these sizes.
        return x[:, :, :image_size, :image_size]
    w = x.shape[-1]
    w_blk = min(_round_up(int(image_size), 128), w)
    if w_blk != w and (int(image_size) / w_blk) < 0.5:
        # <50% lane utilization on the padded output tile: XLA slice wins.
        return x[:, :, :image_size, :image_size]
    return trim_pallas(x, image_size)


if __name__ == "__main__":
    key = jax.random.PRNGKey(0)

    # Small shapes consistent with the module's forward: NCHW image tensor.
    x = jax.random.normal(key, (2, 4, 16, 16), dtype=jnp.float32)
    image_size = 12

    # Force the Pallas path so the kernel is actually exercised on TPU.
    out = trim(x, image_size, force_pallas=True)
    out = jax.block_until_ready(out)
    ref = x[:, :, :image_size, :image_size]
    assert out.shape == (2, 4, image_size, image_size), out.shape
    assert out.dtype == x.dtype
    assert jnp.array_equal(out, ref), "mismatch vs reference slice (test 1)"

    # Second shape: exercises lane-only slicing and a partial trailing
    # channel block (C=3 with tc=2 via cdiv grid).
    key2 = jax.random.PRNGKey(0)
    x2 = jax.random.normal(key2, (1, 3, 48, 256), dtype=jnp.float32)
    out2 = jax.block_until_ready(trim(x2, 40, force_pallas=True))
    ref2 = x2[:, :, :40, :40]
    assert out2.shape == ref2.shape and jnp.array_equal(out2, ref2), \
        "mismatch vs reference slice (test 2)"

    # Sanity-check the dispatcher fast path (plain XLA slice).
    out_fast = jax.block_until_ready(trim(x, image_size))
    assert jnp.array_equal(out_fast, ref)

    print("KERNEL_OK")
</pallas_src>

<mosaic_0001>
module attributes {stable_mosaic.version = 11 : i64} {
  func.func @_slice_hw_kernel(%arg0: i32, %arg1: i32, %arg2: memref<1x4x16x16xf32, #tpu.memory_space<vmem>>, %arg3: memref<1x4x12x12xf32, #tpu.memory_space<vmem>>) attributes {dimension_semantics = [#tpu.dimension_semantics<parallel>, #tpu.dimension_semantics<parallel>], iteration_bounds = array<i64: 2, 1>, scalar_prefetch = 0 : i64, scratch_operands = 0 : i64, tpu.core_type = #tpu.core_type<tc>, window_params = [{transform_indices = @transform_0, window_bounds = array<i64: 1, 4, 16, 16>}, {transform_indices = @transform_1, window_bounds = array<i64: 1, 4, 12, 12>}]} {
    %c0 = arith.constant 0 : index
    %c0_0 = arith.constant 0 : index
    %c0_1 = arith.constant 0 : index
    %c0_2 = arith.constant 0 : index
    %0 = vector.load %arg2[%c0, %c0_0, %c0_1, %c0_2] : memref<1x4x16x16xf32, #tpu.memory_space<vmem>>, vector<1x4x12x12xf32>
    %c0_3 = arith.constant 0 : index
    %c0_4 = arith.constant 0 : index
    %c0_5 = arith.constant 0 : index
    %c0_6 = arith.constant 0 : index
    %1 = vector.load %arg3[%c0_3, %c0_4, %c0_5, %c0_6] : memref<1x4x12x12xf32, #tpu.memory_space<vmem>>, vector<1x4x12x12xf32>
    tpu.vector_store %arg3[%c0_3, %c0_4, %c0_5, %c0_6], %0 {strides = array<i32>} : memref<1x4x12x12xf32, #tpu.memory_space<vmem>>, vector<1x4x12x12xf32>,
    return
  }
  func.func @transform_0(%arg0: i32, %arg1: i32) -> (i32, i32, i32, i32) {
    %c0_i32 = arith.constant 0 : i32
    %c0_i32_0 = arith.constant 0 : i32
    %c0_i32_1 = arith.constant 0 : i32
    return %arg0, %arg1, %c0_i32, %c0_i32_0 : i32, i32, i32, i32
  }
  func.func @transform_1(%arg0: i32, %arg1: i32) -> (i32, i32, i32, i32) {
    %c0_i32 = arith.constant 0 : i32
    %c0_i32_0 = arith.constant 0 : i32
    %c0_i32_1 = arith.constant 0 : i32
    return %arg0, %arg1, %c0_i32, %c0_i32_0 : i32, i32, i32, i32
  }
}

</mosaic_0001>

<bundles_post_ra>
// kernel: tpu_custom_call.1
= control target key start
LH: loop header
LB: loop body
LE: loop exit
PB: predicated region body
PF: predicated region fallthrough
CT: control target
= control target key end

     0   :  { %6 = vsyncpa [#allocation3], 0  ;;  %s586_s0 = inlined_call_operand.hbm [shape: f32[2,4,16,16], index: 0, kind: input, shape index: {}]   ;;  %s587_s1 = inlined_call_operand.vmem [shape: f32[2,4,12,12], index: 1, kind: output, shape index: {}]  }
   0x1   :  { %8 = vsyncpa [#allocation3 + $0x1], 0  ;;  %s454_s6 = smov 0   ;;  %s456_s7 = smov 0  }
   0x2   :  { %s458_s8 = smov 0   ;;  %s460_s9 = smov 0  }
   0x3   :  { %s462_s10 = smov 0   ;;  %s464_s11 = smov 0  }
   0x4 LB: > { %s287_s12 = sadd.s32 4294967295, %s439_s11   ;;  %s26_s13 = sadd.s32 1, %s435_s10  ;;  %s439_s11 = sphi %s464_s11, %s14_s11   ;;  %s435_s10 = sphi %s462_s10, %s595_s10   ;;  %s431_s9 = sphi %s460_s9, %s594_s9   ;;  %s427_s8 = sphi %s458_s8, %s593_s8   ;;  %s423_s7 = sphi %s456_s7, %s592_s7   ;;  %s419_s6 = sphi %s454_s6, %s591_s6  }
   0x5   : > { %p28_p0 = scmp.ge.s32.totalorder %s26_s13, 2  ;;  %s35_s14 = sadd.s32 1, %s427_s8 }
   0x6   : > { %p42_p1 = scmp.ne.s32.totalorder %s427_s8, %s423_s7  ;;  %p43_p2 = scmp.eq.s32.totalorder %s439_s11, 0 }
   0x7   : > { %s597_s13 = smov (%p28_p0, %s26_s13), 0  ;;  %p48_p4 = scmp.ne.s32.totalorder %s423_s7, %s419_s6 }
   0x8   : > { %p490_p3 = por %p43_p2, %p42_p1  ;;  %s30_s16 = ssub.s32 %s435_s10, %s597_s13 }
   0x9   : > { %p49_p5 = scmp.eq.s32.totalorder %s287_s12, 0  ;;  %p33_p6 = scmp.eq.s32.totalorder %s30_s16, 0 }
   0xa   : > { %p308_p8 = scmp.lt.s32.totalorder %s439_s11, 2  ;;  %s100_s19 = sand.u32 1, %s427_s8  }
   0xb   : > { %p497_p7 = por %p49_p5, %p48_p4  ;;  %s300_s20 = sshll.u32 %s435_s10, 10 }
   0xc   : > { %s503_s18 = scalar_select %p33_p6, %s427_s8, %s35_s14  }
   0xd   : > { %s291_s21 = sshll.u32 %s100_s19, 6  ;;  %s510_s24 = scalar_lea.hbm %s586_s0, %s300_s20 }
   0xe   : > { %s104_s25 = scalar_lea.vmem [#allocation2], %s291_s21  ;;  %p514_p9 = pnand %p308_p8, %p490_p3 }
   0xf   : > { %s114_s26 = sshll.u32 %s104_s25, 4  ;;  %s520_s28 = scalar_lea.sflag [#allocation3], %s100_s19  ;;  %s518_s26 = int_to_ptr.vmem [resolvable:$true] %s114_s26 }
  0x10   : > { %s359_s29 = scalar_lea.hbm %s510_s24, 1024  ;;  %p361_p11 = pneg %p514_p9 }
  0x11   : > { %p360_p10 = scmp.ne.s32.totalorder %s510_s24, %s359_s29  ;;  %s364_s3 = scalar_lea.hbm %s586_s0, 2048 }
  0x12   : > { %p365_p0 = scmp.lt.u32.totalorder %s510_s24, %s586_s0  ;;  %p366_p1 = scmp.lt.u32.totalorder %s364_s3, %s359_s29 }
  0x13   : > { %p362_p12 = pnand %p361_p11, %p360_p10  ;;  %p368_p3 = scmp.lt.u32.totalorder %s359_s29, %s510_s24 }
  0x14   : > { %p367_p2 = por %p366_p1, %p365_p0 }
  0x15   : > { %p363_p13 = pneg %p362_p12 }
  0x16   : > { %p369_p4 = por %p368_p3, %p367_p2 }
  0x18   : > { %p370_p5 = pnand %p369_p4, %p363_p13 }
  0x1a   : > { %373 = shalt.err (!%p370_p5)
}
  0x1b   : > { %s374_s6 = scalar_lea.vmem %s518_s26, 1024  ;;  %s441_s12 = smov [#allocation2]  }
  0x1c   : > { %p375_p6 = scmp.ne.s32.totalorder %s518_s26, %s374_s6  ;;  %s379_s14 = sshll.u32 %s441_s12, 4  ;;  %s380_s14 = int_to_ptr.vmem [resolvable:$false] %s379_s14 }
  0x1d   : > { %s381_s15 = scalar_lea.vmem %s380_s14, 2048  ;;  %p382_p12 = scmp.lt.s32.totalorder %s518_s26, %s380_s14 }
  0x1e   : > { %p377_p8 = pnand %p375_p6, %p361_p11  ;;  %p383_p0 = scmp.lt.s32.totalorder %s381_s15, %s374_s6 }
  0x20   : > { %p378_p10 = pneg %p377_p8  ;;  %p384_p1 = por %p383_p0, %p382_p12 }
  0x22   : > { %p385_p2 = pnand %p384_p1, %p378_p10 }
  0x24   : > { %388 = shalt.err (!%p385_p2)
}
  0x25   : > { %s442_s16 = smov 128   ;;  %s443_s19 = smov 8  }
  0x26   : > { %307 = dma.hbm_to_vmem [thread:$0]  (!%p514_p9), %s510_s24, 1024, %s518_s26, %s520_s28, %s442_s16, %s442_s16, %s443_s19  }
  0x27   : > { %p294_p11 = scmp.ge.s32.totalorder %s439_s11, 1  ;;  %p122_p13 = scmp.lt.s32.totalorder %s439_s11, 3 }
  0x29   : > { %p123_p3 = pnand %p294_p11, %p122_p13 }
  0x2a   : > { %s128_s20 = sand.u32 (!%p123_p3), 1, %s423_s7  }
  0x2b   : > { %126 = sbr.rel (%p123_p3) target bundleno = 60 (0x3c), region = 24  ;;  %s295_s21 = sshll.u32 (!%p123_p3), %s128_s20, 6 }
  0x2c   : > { %s129_s22 = scalar_lea.sflag (!%p123_p3), [#allocation3], %s128_s20  ;;  %s132_s23 = scalar_lea.vmem (!%p123_p3), [#allocation2], %s295_s21 }
  0x32   : > { %414 = dma.done.wait (%p497_p7), %s129_s22, 1024  }
  0x33   : > { %416 = vsyncadd (%p497_p7), %s129_s22, 4294966272  ;;  %p158_p4 = scmp.lt.s32.totalorder %s431_s9, 1  ;;  %vm176_vm0 = vcmask 97280   ;;  %vm178_vm1 = vcmask 93184   ;;  %v168_v0 = vld [vmem:[%s132_s23] sm:$0xff]  ;;  %v170_v2 = vld [vmem:[%s132_s23 + $0x10] sm:$0xff] }
  0x34   : > { %v169_v1 = vld [vmem:[%s132_s23 + $0x8] sm:$0xf]  ;;  %v171_v3 = vld [vmem:[%s132_s23 + $0x18] sm:$0xf]  ;;  %v172_v4 = vld [vmem:[%s132_s23 + $0x20] sm:$0xff] }
  0x35   : > { %s599_s9 = smov (!%p158_p4, %s431_s9), 1  ;;  %v173_v5 = vld [vmem:[%s132_s23 + $0x28] sm:$0xf]  ;;  %v174_v6 = vld [vmem:[%s132_s23 + $0x30] sm:$0xff]  ;;  %v175_v7 = vld [vmem:[%s132_s23 + $0x38] sm:$0xf] }
  0x36   : > { %s301_s24 = sshll.u32 %s599_s9, 6 }
  0x37   : > { %s166_s27 = scalar_lea.vmem %s587_s1, %s301_s24 }
  0x38   : > { %177 = vst.msk [vmem:[%s166_s27] sm:$0xff] %vm176_vm0, %v168_v0  ;;  %180 = vst.msk [vmem:[%s166_s27 + $0x10] sm:$0xff] %vm176_vm0, %v170_v2 }
  0x39   : > { %179 = vst.msk [vmem:[%s166_s27 + $0x8] sm:$0xf] %vm178_vm1, %v169_v1  ;;  %181 = vst.msk [vmem:[%s166_s27 + $0x18] sm:$0xf] %vm178_vm1, %v171_v3 }
  0x3a   : > { %182 = vst.msk [vmem:[%s166_s27 + $0x20] sm:$0xff] %vm176_vm0, %v172_v4  ;;  %184 = vst.msk [vmem:[%s166_s27 + $0x30] sm:$0xff] %vm176_vm0, %v174_v6 }
  0x3b   : > { %183 = vst.msk [vmem:[%s166_s27 + $0x28] sm:$0xf] %vm178_vm1, %v173_v5  ;;  %185 = vst.msk [vmem:[%s166_s27 + $0x38] sm:$0xf] %vm178_vm1, %v175_v7 }
  0x3c PF: > { %s14_s11 = sadd.s32 1, %s439_s11   ;;  %s591_s6 = smov %s423_s7 }
  0x3d   : > { %p11_p7 = scmp.ge.s32.totalorder %s14_s11, 4   ;;  %s592_s7 = smov %s427_s8 }
  0x3e   : > { %s593_s8 = smov %s503_s18  ;;  %s594_s9 = smov %s435_s10 }
  0x3f   : > { %s595_s10 = smov %s597_s13  ;;  %13 = sbr.rel (!%p11_p7) target bundleno = 4 (0x4), region = 64 }
  0x46   :  { %218 = vsyncpa [#allocation3], 1 }
  0x47   :  { %220 = vsyncpa [#allocation3 + $0x1], 1 }

</bundles_post_ra>
